<compile_context>
chip_gen: v7x
topology: tpu7x:2x2x1
jax: 0.10.0
libtpu: 0.0.40
codegen_flags: <defaults>
</compile_context>

<pallas_src>
import functools
import math

import jax
import jax.numpy as jnp
from jax.experimental import pallas as pl
from jax.experimental.pallas import tpu as pltpu

_LANE = 128
_SUBLANE = 8
_DEFAULT_TM = 512                       # target rows per grid step
_VMEM_TILE_BUDGET = 40 * 1024 * 1024    # keep tiles under this (v7x-safe)
_VMEM_LIMIT_BYTES = 48 * 1024 * 1024    # raise scoped VMEM limit above default


def _round_up(x, m):
    return ((x + m - 1) // m) * m


def _choose_tm(batch, x_row_bytes, out_row_bytes, resident_bytes):
    """Largest 8-multiple row tile <= _DEFAULT_TM that fits the VMEM budget."""
    tm = min(_DEFAULT_TM, _round_up(batch, _SUBLANE))
    tm = max(_SUBLANE, (tm // _SUBLANE) * _SUBLANE)

    def used(t):
        # x and out tiles are double-buffered by the Pallas pipeline.
        return 2 * t * x_row_bytes + 2 * t * out_row_bytes + resident_bytes

    while tm > _SUBLANE and used(tm) > _VMEM_TILE_BUDGET:
        tm = max(_SUBLANE, (tm // 2 // _SUBLANE) * _SUBLANE)
    return tm


# ----------------------------- kernels ------------------------------------


def _lowrank_kernel(x_ref, u_ref, v_ref, b_ref, o_ref, *, apply_relu, compute_dtype):
    # x_ref: (tm, K), u_ref: (K, rank), v_ref: (rank, Npad), b_ref: (1, Npad)
    x = x_ref[...].astype(compute_dtype)
    u = u_ref[...].astype(compute_dtype)
    t = jnp.dot(x, u, preferred_element_type=jnp.float32)          # MXU, f32 acc
    v = v_ref[...].astype(compute_dtype)
    y = jnp.dot(t.astype(compute_dtype), v, preferred_element_type=jnp.float32)
    y = y + b_ref[...].astype(jnp.float32)
    if apply_relu:
        y = jnp.maximum(y, 0.0)
    o_ref[...] = y.astype(o_ref.dtype)


def _dense_kernel(x_ref, w_ref, b_ref, o_ref, *, apply_relu, compute_dtype):
    # x_ref: (tm, K), w_ref: (K, Npad), b_ref: (1, Npad)
    y = jnp.dot(x_ref[...].astype(compute_dtype),
                w_ref[...].astype(compute_dtype),
                preferred_element_type=jnp.float32)
    y = y + b_ref[...].astype(jnp.float32)
    if apply_relu:
        y = jnp.maximum(y, 0.0)
    o_ref[...] = y.astype(o_ref.dtype)


# ----------------------------- wrappers ------------------------------------


def lowrank_linear(x, u, v, bias, *, apply_relu=False, compute_dtype=jnp.bfloat16):
    """relu_maybe(x @ u @ v + bias) in one fused Pallas TPU kernel."""
    B, K = x.shape
    K2, R = u.shape
    R2, N = v.shape
    assert K == K2 and R == R2 and bias.shape == (N,)

    n_pad = _round_up(N, _LANE)                     # lane-dense output stores
    itemsize = x.dtype.itemsize
    resident = 2 * (K * R + R * n_pad + n_pad) * u.dtype.itemsize
    tm = _choose_tm(B, K * itemsize, n_pad * itemsize, resident)
    b_pad = _round_up(B, tm)                        # ragged last tile -> pad rows
    grid = (b_pad // tm,)

    x_p = x if b_pad == B else jnp.pad(x, ((0, b_pad - B), (0, 0)))
    v_p = v if n_pad == N else jnp.pad(v, ((0, 0), (0, n_pad - N)))
    bias_p = bias if n_pad == N else jnp.pad(bias, (0, n_pad - N))
    bias2d = bias_p.reshape(1, n_pad)

    kernel = functools.partial(_lowrank_kernel, apply_relu=apply_relu,
                               compute_dtype=compute_dtype)
    flops = 2 * B * K * R + 2 * B * R * N
    bytes_accessed = (B * K + K * R + R * N + N + B * N) * itemsize

    out = pl.pallas_call(
        kernel,
        out_shape=jax.ShapeDtypeStruct((b_pad, n_pad), x.dtype),
        grid_spec=pltpu.PrefetchScalarGridSpec(
            num_scalar_prefetch=0,
            grid=grid,
            in_specs=[
                pl.BlockSpec((tm, K), lambda i: (i, 0)),       # x row tile (streamed)
                pl.BlockSpec((K, R), lambda i: (0, 0)),        # u (resident)
                pl.BlockSpec((R, n_pad), lambda i: (0, 0)),    # v (resident)
                pl.BlockSpec((1, n_pad), lambda i: (0, 0)),    # bias (resident)
            ],
            out_specs=pl.BlockSpec((tm, n_pad), lambda i: (i, 0)),
        ),
        compiler_params=pltpu.CompilerParams(
            dimension_semantics=("parallel",),
            vmem_limit_bytes=_VMEM_LIMIT_BYTES,
        ),
        cost_estimate=pl.CostEstimate(
            flops=flops, transcendentals=0, bytes_accessed=bytes_accessed),
    )(x_p, u, v_p, bias2d)
    return out[:B, :N]


def dense_linear(x, w, bias, *, apply_relu=False, compute_dtype=jnp.bfloat16):
    """relu_maybe(x @ w + bias) in one fused Pallas TPU kernel (w is (in, out))."""
    # TODO(synk): add K/N grid tiling for very large dense layers; here the full
    # (in, out) weight stays resident in VMEM, which is fine for MLP-sized dims.
    B, K = x.shape
    K2, N = w.shape
    assert K == K2 and bias.shape == (N,)

    n_pad = _round_up(N, _LANE)
    itemsize = x.dtype.itemsize
    resident = 2 * (K * n_pad + n_pad) * w.dtype.itemsize
    tm = _choose_tm(B, K * itemsize, n_pad * itemsize, resident)
    b_pad = _round_up(B, tm)
    grid = (b_pad // tm,)

    x_p = x if b_pad == B else jnp.pad(x, ((0, b_pad - B), (0, 0)))
    w_p = w if n_pad == N else jnp.pad(w, ((0, 0), (0, n_pad - N)))
    bias_p = bias if n_pad == N else jnp.pad(bias, (0, n_pad - N))
    bias2d = bias_p.reshape(1, n_pad)

    kernel = functools.partial(_dense_kernel, apply_relu=apply_relu,
                               compute_dtype=compute_dtype)
    flops = 2 * B * K * N
    bytes_accessed = (B * K + K * N + N + B * N) * itemsize

    out = pl.pallas_call(
        kernel,
        out_shape=jax.ShapeDtypeStruct((b_pad, n_pad), x.dtype),
        grid_spec=pltpu.PrefetchScalarGridSpec(
            num_scalar_prefetch=0,
            grid=grid,
            in_specs=[
                pl.BlockSpec((tm, K), lambda i: (i, 0)),
                pl.BlockSpec((K, n_pad), lambda i: (0, 0)),
                pl.BlockSpec((1, n_pad), lambda i: (0, 0)),
            ],
            out_specs=pl.BlockSpec((tm, n_pad), lambda i: (i, 0)),
        ),
        compiler_params=pltpu.CompilerParams(
            dimension_semantics=("parallel",),
            vmem_limit_bytes=_VMEM_LIMIT_BYTES,
        ),
        cost_estimate=pl.CostEstimate(
            flops=flops, transcendentals=0, bytes_accessed=bytes_accessed),
    )(x_p, w_p, bias2d)
    return out[:B, :N]


# ----------------------------- MLP (module semantics) ----------------------


def _init_lowrank(key, d_in, d_out, rank, dtype):
    ku, kv, kb = jax.random.split(key, 3)
    # kaiming_uniform_(a=sqrt(5)) on 2D (fan_in = dim 1) -> U(-1/sqrt(fan_in), +)
    bu = 1.0 / math.sqrt(rank)       # u: (in, rank), fan_in = rank
    bv = 1.0 / math.sqrt(d_out)      # v: (rank, out), fan_in = out
    bb = 1.0 / math.sqrt(rank)       # bias bound from fan_in of u
    return dict(kind="lowrank",
                u=jax.random.uniform(ku, (d_in, rank), dtype, -bu, bu),
                v=jax.random.uniform(kv, (rank, d_out), dtype, -bv, bv),
                bias=jax.random.uniform(kb, (d_out,), dtype, -bb, bb))


def _init_dense(key, d_in, d_out, dtype):
    kw, kb = jax.random.split(key)
    bound = 1.0 / math.sqrt(d_in)    # nn.Linear: fan_in = in_features
    return dict(kind="dense",
                w=jax.random.uniform(kw, (d_in, d_out), dtype, -bound, bound),
                bias=jax.random.uniform(kb, (d_out,), dtype, -bound, bound))


def init_mlp_params(key, input_dim, n_hidden, hidden_dim, output_dim, rank=-1,
                    dtype=jnp.float32):
    params = []
    dim_a = input_dim
    for _ in range(n_hidden):
        key, sub = jax.random.split(key)
        params.append(_init_lowrank(sub, dim_a, hidden_dim, rank, dtype)
                      if rank != -1 else _init_dense(sub, dim_a, hidden_dim, dtype))
        dim_a = hidden_dim
    key, sub = jax.random.split(key)
    params.append(_init_lowrank(sub, dim_a, output_dim, rank, dtype)
                  if rank != -1 else _init_dense(sub, dim_a, output_dim, dtype))
    return params


def mlp_forward(x, params, *, do_skip_connections=False, compute_dtype=jnp.bfloat16):
    n_layers = len(params)
    for idx, layer in enumerate(params):
        apply_relu = idx < n_layers - 1        # hidden layers carry ReLU; last does not
        if layer["kind"] == "lowrank":
            y = lowrank_linear(x, layer["u"], layer["v"], layer["bias"],
                               apply_relu=apply_relu, compute_dtype=compute_dtype)
        else:
            y = dense_linear(x, layer["w"], layer["bias"],
                             apply_relu=apply_relu, compute_dtype=compute_dtype)
        # Residual add of the skip connection is a cheap elementwise op kept in
        # the wrapper (XLA fuses it with the surrounding slice).
        x = x + y if do_skip_connections else y
    return x


def mlp_reference(x, params, *, do_skip_connections=False):
    """Pure-JAX f32 reference (highest-precision matmuls)."""
    hp = jax.lax.Precision.HIGHEST
    n_layers = len(params)
    for idx, layer in enumerate(params):
        if layer["kind"] == "lowrank":
            y = jnp.dot(jnp.dot(x, layer["u"], precision=hp), layer["v"],
                        precision=hp) + layer["bias"]
        else:
            y = jnp.dot(x, layer["w"], precision=hp) + layer["bias"]
        if idx < n_layers - 1:
            y = jnp.maximum(y, 0.0)
        x = x + y if do_skip_connections else y
    return x


if __name__ == "__main__":
    key = jax.random.PRNGKey(0)
    kx, kp1, kp2 = jax.random.split(key, 3)

    # Small shapes consistent with the module:
    # MLP(input_dim=32, n_hidden=2, hidden_dim=32, output_dim=32, rank=4,
    #     do_skip_connections=True) on a batch of 8.
    batch, input_dim, hidden_dim, output_dim, rank, n_hidden = 8, 32, 32, 32, 4, 2
    x = jax.random.normal(kx, (batch, input_dim), jnp.float32)

    # Low-rank path with skip connections.
    lr_params = init_mlp_params(kp1, input_dim, n_hidden, hidden_dim, output_dim,
                                rank=rank)
    y_bf16 = jax.block_until_ready(
        mlp_forward(x, lr_params, do_skip_connections=True,
                    compute_dtype=jnp.bfloat16))
    y_f32 = jax.block_until_ready(
        mlp_forward(x, lr_params, do_skip_connections=True,
                    compute_dtype=jnp.float32))
    y_ref = mlp_reference(x, lr_params, do_skip_connections=True)
    assert y_bf16.shape == (batch, output_dim)
    assert jnp.allclose(y_f32, y_ref, atol=2e-2, rtol=2e-2), "f32-path mismatch"
    assert jnp.allclose(y_bf16, y_ref, atol=5e-2, rtol=5e-2), "bf16-path mismatch"

    # Dense path (rank == -1), no skip connections, uneven dims.
    dn_params = init_mlp_params(kp2, input_dim, 1, 48, 16, rank=-1)
    z = jax.block_until_ready(mlp_forward(x, dn_params, compute_dtype=jnp.bfloat16))
    z_ref = mlp_reference(x, dn_params)
    assert z.shape == (batch, 16)
    assert jnp.allclose(z, z_ref, atol=5e-2, rtol=5e-2), "dense-path mismatch"

    print("KERNEL_OK")
</pallas_src>

<mosaic_0001>
module attributes {stable_mosaic.version = 11 : i64} {
  func.func @_lowrank_kernel(%arg0: i32, %arg1: memref<8x32xf32, #tpu.memory_space<vmem>>, %arg2: memref<32x4xf32, #tpu.memory_space<vmem>>, %arg3: memref<4x128xf32, #tpu.memory_space<vmem>>, %arg4: memref<1x128xf32, #tpu.memory_space<vmem>>, %arg5: memref<8x128xf32, #tpu.memory_space<vmem>>) attributes {dimension_semantics = [#tpu.dimension_semantics<parallel>], iteration_bounds = array<i64: 1>, scalar_prefetch = 0 : i64, scratch_operands = 0 : i64, tpu.core_type = #tpu.core_type<tc>, window_params = [{transform_indices = @transform_0, window_bounds = array<i64: 8, 32>}, {pipeline_mode = #tpu.pipeline_mode<synchronous>, transform_indices = @transform_1, window_bounds = array<i64: 32, 4>}, {pipeline_mode = #tpu.pipeline_mode<synchronous>, transform_indices = @transform_2, window_bounds = array<i64: 4, 128>}, {pipeline_mode = #tpu.pipeline_mode<synchronous>, transform_indices = @transform_3, window_bounds = array<i64: 1, 128>}, {transform_indices = @transform_4, window_bounds = array<i64: 8, 128>}]} {
    %c0 = arith.constant 0 : index
    %c0_0 = arith.constant 0 : index
    %0 = vector.load %arg1[%c0, %c0_0] : memref<8x32xf32, #tpu.memory_space<vmem>>, vector<8x32xf32>
    %1 = arith.truncf %0 : vector<8x32xf32> to vector<8x32xbf16>
    %c0_1 = arith.constant 0 : index
    %c0_2 = arith.constant 0 : index
    %2 = vector.load %arg2[%c0_1, %c0_2] : memref<32x4xf32, #tpu.memory_space<vmem>>, vector<32x4xf32>
    %3 = arith.truncf %2 : vector<32x4xf32> to vector<32x4xbf16>
    %cst = arith.constant dense<0.000000e+00> : vector<8x4xf32>
    %4 = tpu.matmul %1, %3, %cst {dimension_numbers = #tpu.dot_dimension_numbers<[1], [0], [0], [1], [0, 0, 1, 1], [], []>} : vector<8x32xbf16>, vector<32x4xbf16>, vector<8x4xf32> -> vector<8x4xf32>
    %c0_3 = arith.constant 0 : index
    %c0_4 = arith.constant 0 : index
    %5 = vector.load %arg3[%c0_3, %c0_4] : memref<4x128xf32, #tpu.memory_space<vmem>>, vector<4x128xf32>
    %6 = arith.truncf %5 : vector<4x128xf32> to vector<4x128xbf16>
    %7 = arith.truncf %4 : vector<8x4xf32> to vector<8x4xbf16>
    %cst_5 = arith.constant dense<0.000000e+00> : vector<8x128xf32>
    %8 = tpu.matmul %7, %6, %cst_5 {dimension_numbers = #tpu.dot_dimension_numbers<[1], [0], [0], [1], [0, 0, 1, 1], [], []>} : vector<8x4xbf16>, vector<4x128xbf16>, vector<8x128xf32> -> vector<8x128xf32>
    %c0_6 = arith.constant 0 : index
    %c0_7 = arith.constant 0 : index
    %9 = vector.load %arg4[%c0_6, %c0_7] : memref<1x128xf32, #tpu.memory_space<vmem>>, vector<1x128xf32>
    %10 = vector.broadcast %9 : vector<1x128xf32> to vector<8x128xf32>
    %11 = arith.addf %8, %10 : vector<8x128xf32>
    %cst_8 = arith.constant 0.000000e+00 : f32
    %12 = vector.broadcast %cst_8 : f32 to vector<8x128xf32>
    %13 = arith.maximumf %11, %12 : vector<8x128xf32>
    %c0_9 = arith.constant 0 : index
    %c0_10 = arith.constant 0 : index
    %14 = vector.load %arg5[%c0_9, %c0_10] : memref<8x128xf32, #tpu.memory_space<vmem>>, vector<8x128xf32>
    tpu.vector_store %arg5[%c0_9, %c0_10], %13 {strides = array<i32>} : memref<8x128xf32, #tpu.memory_space<vmem>>, vector<8x128xf32>,
    return
  }
  func.func @transform_0(%arg0: i32) -> (i32, i32) {
    %c0_i32 = arith.constant 0 : i32
    %c0_i32_0 = arith.constant 0 : i32
    return %arg0, %c0_i32 : i32, i32
  }
  func.func @transform_1(%arg0: i32) -> (i32, i32) {
    %c0_i32 = arith.constant 0 : i32
    %c0_i32_0 = arith.constant 0 : i32
    %c0_i32_1 = arith.constant 0 : i32
    return %c0_i32, %c0_i32_0 : i32, i32
  }
  func.func @transform_2(%arg0: i32) -> (i32, i32) {
    %c0_i32 = arith.constant 0 : i32
    %c0_i32_0 = arith.constant 0 : i32
    %c0_i32_1 = arith.constant 0 : i32
    return %c0_i32, %c0_i32_0 : i32, i32
  }
  func.func @transform_3(%arg0: i32) -> (i32, i32) {
    %c0_i32 = arith.constant 0 : i32
    %c0_i32_0 = arith.constant 0 : i32
    %c0_i32_1 = arith.constant 0 : i32
    return %c0_i32, %c0_i32_0 : i32, i32
  }
  func.func @transform_4(%arg0: i32) -> (i32, i32) {
    %c0_i32 = arith.constant 0 : i32
    %c0_i32_0 = arith.constant 0 : i32
    return %arg0, %c0_i32 : i32, i32
  }
}

</mosaic_0001>

<bundles_post_ra>
// kernel: tpu_custom_call.1
= control target key start
LH: loop header
LB: loop body
LE: loop exit
PB: predicated region body
PF: predicated region fallthrough
CT: control target
= control target key end

     0   :  { %v194_v3 = vmov 0.0   ;;  %vm195_vm0 = vmmov 0   ;;  %s255_s0 = inlined_call_operand.vmem [shape: f32[8,32], index: 0, kind: input, shape index: {}]   ;;  %s256_s1 = inlined_call_operand.vmem [shape: f32[32,4], index: 1, kind: input, shape index: {}]   ;;  %s257_s2 = inlined_call_operand.vmem [shape: f32[4,128], index: 2, kind: input, shape index: {}]   ;;  %s258_s3 = inlined_call_operand.vmem [shape: f32[1,128], index: 3, kind: input, shape index: {}]   ;;  %s259_s4 = inlined_call_operand.hbm [shape: f32[8,128], index: 4, kind: output, shape index: {}]  }
   0x1   :  { %v21_v0 = vld [vmem:[%s256_s1] sm:$0xff]  ;;  %v22_v1 = vld [vmem:[%s256_s1 + $0x8] sm:$0xff]  ;;  %v23_v2 = vld [vmem:[%s256_s1 + $0x10] sm:$0xff]  ;;  %153 = vmatprep.subr.bf16.mxu0 %v194_v3  ;;  %157 = vmatprep.mubr.msk.bf16.mxu0 %vm195_vm0, %v194_v3 }
   0x2   :  { %v25_v4 = vpack.c.bf16 %v22_v1, %v21_v0  ;;  %v24_v5 = vld [vmem:[%s256_s1 + $0x18] sm:$0xff] }
   0x3   :  { %9 = vsyncpa [#allocation3], 0  ;;  %161 = vmatprep.subr.bf16.mxu1 %v194_v3  ;;  %163 = vmatprep.mubr.msk.bf16.mxu1 %vm195_vm0, %v194_v3  ;;  %v26_v6 = vpack.c.bf16 %v24_v5, %v23_v2  ;;  %v19_v7 = vld [vmem:[%s255_s0] sm:$0xff]  ;;  %vm27_vm1 = vcmask 261120   ;;  %vm85_vm2 = vcmask 1041408   ;;  %vm81_vm3 = vcmask 31744  }
   0x4   :  { %154 = vmatpush3.bf16.msra.mxu0 %v25_v4  ;;  %v20_v8 = vpack.c.bf16 %v19_v7, %v19_v7  ;;  %v71_v9 = vld [vmem:[%s257_s2] sm:$0xf]  ;;  %s196_s27 = smov [#allocation2]  }
   0x5   :  { %155 = vmatprep.subr.bf16.mxu0 %v194_v3  ;;  %v72_v10 = vpack.c.bf16 %v71_v9, %v71_v9  ;;  %v146_v17 = vld [vmem:[%s258_s3] ss:$0 sm:$0xff]  ;;  %s137_s28 = sshll.u32 %s196_s27, 4  ;;  %s138_s28 = int_to_ptr.vmem [resolvable:$true] %s137_s28 }
   0x6   :  { %s170_s2 = scalar_lea.vmem %s138_s28, 128  ;;  %p175_p1 = scmp.lt.s32.totalorder %s138_s28, %s138_s28 }
   0x7   :  { %v87_v11 = vsel %vm85_vm2, %v72_v10, 0  ;;  %p171_p0 = scmp.ne.s32.totalorder %s138_s28, %s170_s2  ;;  %p176_p2 = scmp.lt.s32.totalorder %s170_s2, %s170_s2 }
   0x8   :  { %156 = vmatpush3.bf16.msra.mxu0 %v26_v6  ;;  %162 = vmatpush3.bf16.msra.mxu1 %v87_v11 }
   0x9   :  { %p177_p3 = por %p176_p2, %p175_p1 }
   0xb   :  { %158 = vmatmul.mubr.msk.bf16.vlgmr.msra.gmra.mrb[0].mxu0 %vm27_vm1, %v20_v8  ;;  %p178_p4 = pnand %p177_p3, %p171_p0 }
  0xde   :  { %v65_v12 = vpop.f32.mrb[0].mxu0 }
  0xdf   :  { %v73_v13 = vpack.c.bf16 %v65_v12, %v65_v12  ;;  %v159_v14 = vpop.f32.mrb[1].mxu0 }
  0xe0   :  { %v68_v15 = vpop.f32.mrb[2].mxu0 }
  0xe1   :  { %v160_v16 = vpop.f32.mrb[3].mxu0  ;;  %164 = vmatmul.mubr.msk.bf16.vlgmr.msra.gmra.mrb[0].mxu1 %vm81_vm3, %v73_v13 }
 0x1b4   :  { %v123_v18 = vpop.f32.mrb[0].mxu1 }
 0x1b5   :  { %v124_v19 = vadd.f32 %v146_v17, %v123_v18  ;;  %v165_v20 = vpop.f32.mrb[1].mxu1 }
 0x1b6   :  { %v126_v21 = vpop.f32.mrb[2].mxu1 }
 0x1b7   :  { %v129_v22 = vmax.f32 %v124_v19, 0.0  ;;  %v166_v23 = vpop.f32.mrb[3].mxu1 }
 0x1b9   :  { %130 = vst [vmem:[#allocation2] sm:$0xff] %v129_v22 }
 0x1ba   :  { %181 = shalt.err (!%p178_p4)
}
 0x1bb   :  { %s182_s3 = scalar_lea.hbm %s259_s4, 128 }
 0x1bc   :  { %p183_p5 = scmp.ne.s32.totalorder %s259_s4, %s182_s3  ;;  %p186_p6 = scmp.lt.u32.totalorder %s182_s3, %s259_s4 }
 0x1be   :  { %p188_p7 = pnand %p186_p6, %p183_p5 }
 0x1c0   :  { %191 = shalt.err (!%p188_p7)
}
 0x1c1   :  { %140 = dma.vmem_to_hbm [thread:$0]  %s138_s28, 128, %s259_s4, [#allocation3]  }
 0x1c2   :  { %192 = dma.done.wait [#allocation3], 128  }
 0x1c3   :  { %193 = vsyncadd [#allocation3], 4294967168 }
 0x1c4   :  { %144 = vsyncpa [#allocation3], 1 }

</bundles_post_ra>
